<compile_context>
chip_gen: v7x
topology: tpu7x:2x2x1
jax: 0.10.0
libtpu: 0.0.40
codegen_flags: <defaults>
</compile_context>

<pallas_src>
import jax
import jax.numpy as jnp
from jax.experimental import pallas as pl
from jax.experimental.pallas import tpu as pltpu

VOCAB = 32
IN_FEATS = 16
H_FEATS = 32
NUM_CLASSES = 8
N_NODES = 64
LANES = 128

# Row layout of the packed parameter slab ([SLAB_ROWS, 128] f32, zero padded):
EMB_OFF = 0                        # rows [0,32):    embedding table, cols [0,16)
WS1_OFF = VOCAB                    # rows [32,160):  W_self1  at rel rows 0..15, cols [0,32)
WN1_OFF = WS1_OFF + LANES          # rows [160,288): W_neigh1 at rel rows 0..15, cols [0,32)
WS2_OFF = WN1_OFF + LANES          # rows [288,416): W_self2  at rel rows 0..31, cols [0,8)
WN2_OFF = WS2_OFF + LANES          # rows [416,544): W_neigh2 at rel rows 0..31, cols [0,8)
B1_ROW = WN2_OFF + LANES           # row 544: b1, cols [0,32)
B2_ROW = B1_ROW + 8                # row 552: b2, cols [0,8)
SLAB_ROWS = B2_ROW + 8             # 560 rows (multiple of 8)


def sage_graph_kernel(attr_ref, nodew_ref, adj_ref, slab_ref, out_ref):
    n = attr_ref.shape[1]

    ids = attr_ref[0]                                   # [N, 1] int32
    w_node = nodew_ref[0]                               # [N, 1] f32
    adj = adj_ref[0]                                    # [N, N] f32, rows pre-scaled by 1/in_deg

    # Static row-slices of the packed parameter slab (lane-dense, 128 wide).
    emb = slab_ref[EMB_OFF:EMB_OFF + VOCAB, :]          # [32, 128]  (cols >= 16 are zero)
    ws1 = slab_ref[WS1_OFF:WS1_OFF + LANES, :]          # [128, 128] rows 0..15 -> cols 0..31
    wn1 = slab_ref[WN1_OFF:WN1_OFF + LANES, :]          # [128, 128] rows 0..15 -> cols 0..31
    ws2 = slab_ref[WS2_OFF:WS2_OFF + LANES, :]          # [128, 128] rows 0..31 -> cols 0..7
    wn2 = slab_ref[WN2_OFF:WN2_OFF + LANES, :]          # [128, 128] rows 0..31 -> cols 0..7
    b1 = slab_ref[B1_ROW:B1_ROW + 1, :]                 # [1, 128]
    b2 = slab_ref[B2_ROW:B2_ROW + 1, :]                 # [1, 128]

    # --- nn.Embedding(vocab, in_feats, max_norm=1.0): one-hot @ table (MXU) ---
    vocab_iota = jax.lax.broadcasted_iota(jnp.int32, (n, VOCAB), 1)
    onehot = (ids == vocab_iota).astype(jnp.float32)                       # [N, 32]
    e = jnp.dot(onehot, emb, preferred_element_type=jnp.float32)           # [N, 128], cols>=16 zero
    # max_norm renorm: scale rows with ||e||_2 > 1.0 by 1/||e|| (rsqrt on the EUP).
    norm_sq = jnp.sum(e * e, axis=-1, keepdims=True)
    inv_norm = jax.lax.rsqrt(jnp.maximum(norm_sq, 1e-30))
    e = e * jnp.where(norm_sq > 1.0, inv_norm, 1.0)

    # --- h = embed(attr).squeeze() * g.ndata['w'] ---
    h = e * w_node                                                         # [N, 128]
    # TODO(synk): Dropout(p=0.4) implemented as eval-mode identity (stochastic
    #             training-time masking has no deterministic equivalent).

    # --- SAGEConv #1 ('mean', edge-weighted) ---
    # mean aggregation is already baked into adj (row pre-scaled by 1/in_deg).
    neigh1 = jnp.dot(adj, h, preferred_element_type=jnp.float32)           # [N, 128], cols>=16 zero
    h1 = (jnp.dot(h, ws1, preferred_element_type=jnp.float32)
          + jnp.dot(neigh1, wn1, preferred_element_type=jnp.float32)
          + b1)                                                            # [N, 128], cols 0..31

    # --- SAGEConv #2 ---
    neigh2 = jnp.dot(adj, h1, preferred_element_type=jnp.float32)          # [N, 128], cols 0..31
    h2 = (jnp.dot(h1, ws2, preferred_element_type=jnp.float32)
          + jnp.dot(neigh2, wn2, preferred_element_type=jnp.float32)
          + b2)                                                            # [N, 128], cols 0..7

    # --- dgl.mean_nodes(g, 'h', weight='w'): weighted node readout ---
    num = jnp.sum(h2 * w_node, axis=0, keepdims=True)                      # [1, 128]
    out_ref[0] = num / jnp.sum(w_node)


def _pack_params(params):
    """Pack all small parameters into one zero-padded [SLAB_ROWS, 128] f32 slab."""
    slab = jnp.zeros((SLAB_ROWS, LANES), jnp.float32)
    slab = slab.at[EMB_OFF:EMB_OFF + VOCAB, :IN_FEATS].set(params["emb"])
    slab = slab.at[WS1_OFF:WS1_OFF + IN_FEATS, :H_FEATS].set(params["w_self1"])
    slab = slab.at[WN1_OFF:WN1_OFF + IN_FEATS, :H_FEATS].set(params["w_neigh1"])
    slab = slab.at[WS2_OFF:WS2_OFF + H_FEATS, :NUM_CLASSES].set(params["w_self2"])
    slab = slab.at[WN2_OFF:WN2_OFF + H_FEATS, :NUM_CLASSES].set(params["w_neigh2"])
    slab = slab.at[B1_ROW, :H_FEATS].set(params["b1"][0])
    slab = slab.at[B2_ROW, :NUM_CLASSES].set(params["b2"][0])
    return slab


def sage_graph_forward(attr, node_w, adj, deg, params):
    """attr: [B,N,1] int32, node_w: [B,N,1] f32, adj: [B,N,N] f32 (A[b,dst,src]),
    deg: [B,N,1] f32 unweighted in-degree counts."""
    B, N, _ = attr.shape
    # Pre-normalize adjacency: mean aggregation == row scale of A (0-deg rows -> 0).
    inv_deg = jnp.where(deg > 0.0, 1.0 / jnp.maximum(deg, 1.0), 0.0)       # [B, N, 1]
    adj_norm = adj * inv_deg
    slab = _pack_params(params)

    out = pl.pallas_call(
        sage_graph_kernel,
        out_shape=jax.ShapeDtypeStruct((B, 1, LANES), jnp.float32),
        grid_spec=pltpu.PrefetchScalarGridSpec(
            num_scalar_prefetch=0,
            grid=(B,),
            in_specs=[
                pl.BlockSpec((1, N, 1), lambda b: (b, 0, 0)),              # attr
                pl.BlockSpec((1, N, 1), lambda b: (b, 0, 0)),              # node weights
                pl.BlockSpec((1, N, N), lambda b: (b, 0, 0)),              # normalized adjacency
                pl.BlockSpec((SLAB_ROWS, LANES), lambda b: (0, 0)),        # param slab (resident)
            ],
            out_specs=pl.BlockSpec((1, 1, LANES), lambda b: (b, 0, 0)),
        ),
        compiler_params=pltpu.CompilerParams(
            dimension_semantics=("parallel",)),
    )(attr, node_w, adj_norm, slab)
    return out[:, 0, :NUM_CLASSES]


def sage_graph_reference(attr, node_w, adj, deg, params):
    """Pure-JAX reference of the same forward pass (for a sanity check)."""
    ids = attr[..., 0]                                                     # [B, N]
    e = params["emb"][ids]                                                 # [B, N, F]
    norm = jnp.sqrt(jnp.sum(e * e, axis=-1, keepdims=True))
    e = e * jnp.where(norm > 1.0, 1.0 / (norm + 1e-7), 1.0)
    h = e * node_w
    inv_deg = jnp.where(deg > 0.0, 1.0 / jnp.maximum(deg, 1.0), 0.0)
    neigh1 = jnp.einsum("bvu,buf->bvf", adj, h) * inv_deg
    h1 = h @ params["w_self1"] + neigh1 @ params["w_neigh1"] + params["b1"]
    neigh2 = jnp.einsum("bvu,buf->bvf", adj, h1) * inv_deg
    h2 = h1 @ params["w_self2"] + neigh2 @ params["w_neigh2"] + params["b2"]
    return jnp.sum(h2 * node_w, axis=1) / jnp.sum(node_w, axis=1)


if __name__ == "__main__":
    B = 4
    key = jax.random.PRNGKey(0)
    (k_emb, k_ws1, k_wn1, k_ws2, k_wn2,
     k_attr, k_nw, k_adj, k_ew) = jax.random.split(key, 9)

    # Deterministic parameter init (shapes from SAGEGraph.__init__)
    params = {
        "emb":      jax.random.normal(k_emb, (VOCAB, IN_FEATS), jnp.float32),
        "w_self1":  jax.random.normal(k_ws1, (IN_FEATS, H_FEATS), jnp.float32) / (IN_FEATS ** 0.5),
        "w_neigh1": jax.random.normal(k_wn1, (IN_FEATS, H_FEATS), jnp.float32) / (IN_FEATS ** 0.5),
        "b1":       jnp.zeros((1, H_FEATS), jnp.float32),
        "w_self2":  jax.random.normal(k_ws2, (H_FEATS, NUM_CLASSES), jnp.float32) / (H_FEATS ** 0.5),
        "w_neigh2": jax.random.normal(k_wn2, (H_FEATS, NUM_CLASSES), jnp.float32) / (H_FEATS ** 0.5),
        "b2":       jnp.zeros((1, NUM_CLASSES), jnp.float32),
    }

    # Deterministic synthetic batch of B graphs, N_NODES each.
    attr = jax.random.randint(k_attr, (B, N_NODES, 1), 0, VOCAB, jnp.int32)      # g.ndata['attr']
    node_w = jax.random.uniform(k_nw, (B, N_NODES, 1), jnp.float32, 0.1, 1.0)    # g.ndata['w']

    # ring (i-1 -> i, wrap) plus ~10% random extra edges; no self loops
    rand_mask = jax.random.uniform(k_adj, (B, N_NODES, N_NODES)) < 0.1
    ring = jnp.eye(N_NODES, k=-1, dtype=bool) | jnp.eye(N_NODES, k=N_NODES - 1, dtype=bool)
    mask = (rand_mask | ring[None]) & ~jnp.eye(N_NODES, dtype=bool)[None]
    edge_w = jax.random.uniform(k_ew, (B, N_NODES, N_NODES), jnp.float32, 0.5, 1.5)  # g.edata['w']
    adj = jnp.where(mask, edge_w, 0.0)                                           # A[b, dst, src]
    deg = jnp.sum(mask, axis=2, keepdims=True).astype(jnp.float32)               # in-degree counts

    out = jax.jit(sage_graph_forward)(attr, node_w, adj, deg, params)
    jax.block_until_ready(out)
    assert out.shape == (B, NUM_CLASSES) and out.dtype == jnp.float32

    ref = sage_graph_reference(attr, node_w, adj, deg, params)
    assert jnp.allclose(out, ref, rtol=1e-2, atol=1e-3), (out, ref)

    print("KERNEL_OK")
</pallas_src>

<mosaic_0001>
module attributes {stable_mosaic.version = 11 : i64} {
  func.func @sage_graph_kernel(%arg0: i32, %arg1: memref<1x64x1xi32, #tpu.memory_space<vmem>>, %arg2: memref<1x64x1xf32, #tpu.memory_space<vmem>>, %arg3: memref<1x64x64xf32, #tpu.memory_space<vmem>>, %arg4: memref<560x128xf32, #tpu.memory_space<vmem>>, %arg5: memref<1x1x128xf32, #tpu.memory_space<vmem>>) attributes {dimension_semantics = [#tpu.dimension_semantics<parallel>], iteration_bounds = array<i64: 4>, scalar_prefetch = 0 : i64, scratch_operands = 0 : i64, tpu.core_type = #tpu.core_type<tc>, window_params = [{transform_indices = @transform_0, window_bounds = array<i64: 1, 64, 1>}, {transform_indices = @transform_1, window_bounds = array<i64: 1, 64, 1>}, {transform_indices = @transform_2, window_bounds = array<i64: 1, 64, 64>}, {pipeline_mode = #tpu.pipeline_mode<synchronous>, transform_indices = @transform_3, window_bounds = array<i64: 560, 128>}, {transform_indices = @transform_4, window_bounds = array<i64: 1, 1, 128>}]} {
    %c0 = arith.constant 0 : index
    %c0_0 = arith.constant 0 : index
    %c0_1 = arith.constant 0 : index
    %0 = vector.load %arg1[%c0, %c0_0, %c0_1] : memref<1x64x1xi32, #tpu.memory_space<vmem>>, vector<1x64x1xi32>
    %1 = vector.shape_cast %0 : vector<1x64x1xi32> to vector<64x1xi32>
    %c0_2 = arith.constant 0 : index
    %c0_3 = arith.constant 0 : index
    %c0_4 = arith.constant 0 : index
    %2 = vector.load %arg2[%c0_2, %c0_3, %c0_4] : memref<1x64x1xf32, #tpu.memory_space<vmem>>, vector<1x64x1xf32>
    %3 = vector.shape_cast %2 : vector<1x64x1xf32> to vector<64x1xf32>
    %c0_5 = arith.constant 0 : index
    %c0_6 = arith.constant 0 : index
    %c0_7 = arith.constant 0 : index
    %4 = vector.load %arg3[%c0_5, %c0_6, %c0_7] : memref<1x64x64xf32, #tpu.memory_space<vmem>>, vector<1x64x64xf32>
    %5 = vector.shape_cast %4 : vector<1x64x64xf32> to vector<64x64xf32>
    %c0_8 = arith.constant 0 : index
    %c0_9 = arith.constant 0 : index
    %6 = vector.load %arg4[%c0_8, %c0_9] : memref<560x128xf32, #tpu.memory_space<vmem>>, vector<32x128xf32>
    %c32 = arith.constant 32 : index
    %c0_10 = arith.constant 0 : index
    %7 = vector.load %arg4[%c32, %c0_10] : memref<560x128xf32, #tpu.memory_space<vmem>>, vector<128x128xf32>
    %c160 = arith.constant 160 : index
    %c0_11 = arith.constant 0 : index
    %8 = vector.load %arg4[%c160, %c0_11] : memref<560x128xf32, #tpu.memory_space<vmem>>, vector<128x128xf32>
    %c288 = arith.constant 288 : index
    %c0_12 = arith.constant 0 : index
    %9 = vector.load %arg4[%c288, %c0_12] : memref<560x128xf32, #tpu.memory_space<vmem>>, vector<128x128xf32>
    %c416 = arith.constant 416 : index
    %c0_13 = arith.constant 0 : index
    %10 = vector.load %arg4[%c416, %c0_13] : memref<560x128xf32, #tpu.memory_space<vmem>>, vector<128x128xf32>
    %c544 = arith.constant 544 : index
    %c0_14 = arith.constant 0 : index
    %11 = vector.load %arg4[%c544, %c0_14] : memref<560x128xf32, #tpu.memory_space<vmem>>, vector<1x128xf32>
    %c552 = arith.constant 552 : index
    %c0_15 = arith.constant 0 : index
    %12 = vector.load %arg4[%c552, %c0_15] : memref<560x128xf32, #tpu.memory_space<vmem>>, vector<1x128xf32>
    %13 = tpu.iota {dimensions = array<i32: 1>} : vector<64x32xi32>
    %14 = vector.broadcast %1 : vector<64x1xi32> to vector<64x32xi32>
    %15 = arith.cmpi eq, %14, %13 : vector<64x32xi32>
    %16 = arith.extui %15 : vector<64x32xi1> to vector<64x32xi32>
    %17 = arith.sitofp %16 : vector<64x32xi32> to vector<64x32xf32>
    %cst = arith.constant dense<0.000000e+00> : vector<64x128xf32>
    %18 = tpu.matmul %17, %6, %cst {dimension_numbers = #tpu.dot_dimension_numbers<[1], [0], [0], [1], [0, 0, 1, 1], [], []>} : vector<64x32xf32>, vector<32x128xf32>, vector<64x128xf32> -> vector<64x128xf32>
    %19 = arith.mulf %18, %18 : vector<64x128xf32>
    %cst_16 = arith.constant dense<0.000000e+00> : vector<64xf32>
    %20 = vector.multi_reduction <add>, %19, %cst_16 [1] : vector<64x128xf32> to vector<64xf32>
    %21 = vector.shape_cast %20 : vector<64xf32> to vector<64x1xf32>
    %cst_17 = arith.constant 1.000000e-30 : f32
    %22 = vector.broadcast %cst_17 : f32 to vector<64x1xf32>
    %23 = arith.maximumf %21, %22 : vector<64x1xf32>
    %24 = math.rsqrt %23 : vector<64x1xf32>
    %cst_18 = arith.constant 1.000000e+00 : f32
    %25 = vector.broadcast %cst_18 : f32 to vector<64x1xf32>
    %26 = arith.cmpf ogt, %21, %25 : vector<64x1xf32>
    %cst_19 = arith.constant 1.000000e+00 : f32
    %27 = vector.broadcast %cst_19 : f32 to vector<64x1xf32>
    %28 = arith.select %26, %24, %27 : vector<64x1xi1>, vector<64x1xf32>
    %29 = vector.broadcast %28 : vector<64x1xf32> to vector<64x128xf32>
    %30 = arith.mulf %18, %29 : vector<64x128xf32>
    %31 = vector.broadcast %3 : vector<64x1xf32> to vector<64x128xf32>
    %32 = arith.mulf %30, %31 : vector<64x128xf32>
    %cst_20 = arith.constant dense<0.000000e+00> : vector<64x128xf32>
    %33 = tpu.matmul %5, %32, %cst_20 {dimension_numbers = #tpu.dot_dimension_numbers<[1], [0], [0], [1], [0, 0, 1, 1], [], []>} : vector<64x64xf32>, vector<64x128xf32>, vector<64x128xf32> -> vector<64x128xf32>
    %cst_21 = arith.constant dense<0.000000e+00> : vector<64x128xf32>
    %34 = tpu.matmul %32, %7, %cst_21 {dimension_numbers = #tpu.dot_dimension_numbers<[1], [0], [0], [1], [0, 0, 1, 1], [], []>} : vector<64x128xf32>, vector<128x128xf32>, vector<64x128xf32> -> vector<64x128xf32>
    %cst_22 = arith.constant dense<0.000000e+00> : vector<64x128xf32>
    %35 = tpu.matmul %33, %8, %cst_22 {dimension_numbers = #tpu.dot_dimension_numbers<[1], [0], [0], [1], [0, 0, 1, 1], [], []>} : vector<64x128xf32>, vector<128x128xf32>, vector<64x128xf32> -> vector<64x128xf32>
    %36 = arith.addf %34, %35 : vector<64x128xf32>
    %37 = vector.broadcast %11 : vector<1x128xf32> to vector<64x128xf32>
    %38 = arith.addf %36, %37 : vector<64x128xf32>
    %cst_23 = arith.constant dense<0.000000e+00> : vector<64x128xf32>
    %39 = tpu.matmul %5, %38, %cst_23 {dimension_numbers = #tpu.dot_dimension_numbers<[1], [0], [0], [1], [0, 0, 1, 1], [], []>} : vector<64x64xf32>, vector<64x128xf32>, vector<64x128xf32> -> vector<64x128xf32>
    %cst_24 = arith.constant dense<0.000000e+00> : vector<64x128xf32>
    %40 = tpu.matmul %38, %9, %cst_24 {dimension_numbers = #tpu.dot_dimension_numbers<[1], [0], [0], [1], [0, 0, 1, 1], [], []>} : vector<64x128xf32>, vector<128x128xf32>, vector<64x128xf32> -> vector<64x128xf32>
    %cst_25 = arith.constant dense<0.000000e+00> : vector<64x128xf32>
    %41 = tpu.matmul %39, %10, %cst_25 {dimension_numbers = #tpu.dot_dimension_numbers<[1], [0], [0], [1], [0, 0, 1, 1], [], []>} : vector<64x128xf32>, vector<128x128xf32>, vector<64x128xf32> -> vector<64x128xf32>
    %42 = arith.addf %40, %41 : vector<64x128xf32>
    %43 = vector.broadcast %12 : vector<1x128xf32> to vector<64x128xf32>
    %44 = arith.addf %42, %43 : vector<64x128xf32>
    %45 = vector.broadcast %3 : vector<64x1xf32> to vector<64x128xf32>
    %46 = arith.mulf %44, %45 : vector<64x128xf32>
    %cst_26 = arith.constant dense<0.000000e+00> : vector<128xf32>
    %47 = vector.multi_reduction <add>, %46, %cst_26 [0] : vector<64x128xf32> to vector<128xf32>
    %48 = vector.shape_cast %47 : vector<128xf32> to vector<1x128xf32>
    %49 = vector.shape_cast %3 : vector<64x1xf32> to vector<1x64x1xf32>
    %cst_27 = arith.constant dense<0.000000e+00> : vector<1xf32>
    %50 = vector.multi_reduction <add>, %49, %cst_27 [1, 2] : vector<1x64x1xf32> to vector<1xf32>
    %51 = vector.shape_cast %50 : vector<1xf32> to vector<1x1x1xf32>
    %52 = vector.extract %51[0, 0, 0] : f32 from vector<1x1x1xf32>
    %53 = vector.broadcast %52 : f32 to vector<1x128xf32>
    %54 = arith.divf %48, %53 : vector<1x128xf32>
    %c0_28 = arith.constant 0 : index
    %c0_29 = arith.constant 0 : index
    %c0_30 = arith.constant 0 : index
    %55 = vector.load %arg5[%c0_28, %c0_29, %c0_30] : memref<1x1x128xf32, #tpu.memory_space<vmem>>, vector<1x1x128xf32>
    %56 = vector.shape_cast %55 : vector<1x1x128xf32> to vector<1x128xf32>
    %57 = vector.shape_cast %54 : vector<1x128xf32> to vector<1x1x128xf32>
    tpu.vector_store %arg5[%c0_28, %c0_29, %c0_30], %57 {strides = array<i32>} : memref<1x1x128xf32, #tpu.memory_space<vmem>>, vector<1x1x128xf32>,
    return
  }
  func.func @transform_0(%arg0: i32) -> (i32, i32, i32) {
    %c0_i32 = arith.constant 0 : i32
    %c0_i32_0 = arith.constant 0 : i32
    %c0_i32_1 = arith.constant 0 : i32
    return %arg0, %c0_i32, %c0_i32_0 : i32, i32, i32
  }
  func.func @transform_1(%arg0: i32) -> (i32, i32, i32) {
    %c0_i32 = arith.constant 0 : i32
    %c0_i32_0 = arith.constant 0 : i32
    %c0_i32_1 = arith.constant 0 : i32
    return %arg0, %c0_i32, %c0_i32_0 : i32, i32, i32
  }
  func.func @transform_2(%arg0: i32) -> (i32, i32, i32) {
    %c0_i32 = arith.constant 0 : i32
    %c0_i32_0 = arith.constant 0 : i32
    %c0_i32_1 = arith.constant 0 : i32
    return %arg0, %c0_i32, %c0_i32_0 : i32, i32, i32
  }
  func.func @transform_3(%arg0: i32) -> (i32, i32) {
    %c0_i32 = arith.constant 0 : i32
    %c0_i32_0 = arith.constant 0 : i32
    %c0_i32_1 = arith.constant 0 : i32
    return %c0_i32, %c0_i32_0 : i32, i32
  }
  func.func @transform_4(%arg0: i32) -> (i32, i32, i32) {
    %c0_i32 = arith.constant 0 : i32
    %c0_i32_0 = arith.constant 0 : i32
    %c0_i32_1 = arith.constant 0 : i32
    return %arg0, %c0_i32, %c0_i32_0 : i32, i32, i32
  }
}

</mosaic_0001>

<bundles_post_ra>
// kernel: sage_graph_forward.1
= control target key start
LH: loop header
LB: loop body
LE: loop exit
PB: predicated region body
PF: predicated region fallthrough
CT: control target
= control target key end

     0   :  { %9 = vsyncpa [#allocation3], 0  ;;  %s2781_s0 = inlined_call_operand.vmem [shape: s32[4,64,1], index: 0, kind: input, shape index: {}]   ;;  %s2782_s1 = inlined_call_operand.vmem [shape: f32[4,64,1], index: 1, kind: input, shape index: {}]   ;;  %s2783_s2 = inlined_call_operand.vmem [shape: f32[4,64,64], index: 2, kind: input, shape index: {}]   ;;  %s2784_s3 = inlined_call_operand.vmem [shape: f32[560,128], index: 3, kind: input, shape index: {}]   ;;  %s2785_s4 = inlined_call_operand.hbm [shape: f32[4,1,128], index: 4, kind: output, shape index: {}]  }
   0x1   :  { %11 = vsyncpa [#allocation3 + $0x1], 0  ;;  %s2223_s15 = smov 0   ;;  %s2225_s16 = smov 0  }
   0x2   :  { %s2227_s17 = smov 0   ;;  %s2229_s18 = smov 0  }
   0x3 LB: > { %s2244_s19 = sadd.s32 4294967295, %s2193_s18   ;;  %s1442_s20 = sadd.s32 4294967294, %s2193_s18   ;;  %s2193_s18 = sphi %s2229_s18, %s2791_s18   ;;  %s2189_s17 = sphi %s2227_s17, %s2790_s17   ;;  %s2185_s16 = sphi %s2225_s16, %s2789_s16   ;;  %s2181_s15 = sphi %s2223_s15, %s2788_s15  }
   0x4   : > { %s2248_s21 = sadd.s32 1, %s2193_s18   ;;  %s123_s22 = sadd.s32 1, %s2189_s17 }
   0x5   : > { %s120_s23 = ssub.s32 %s2193_s18, %s2248_s21  ;;  %p133_p0 = scmp.ne.s32.totalorder %s2189_s17, %s2185_s16 }
   0x6   : > { %p121_p1 = scmp.eq.s32.totalorder %s120_s23, 0  ;;  %p134_p2 = scmp.eq.s32.totalorder %s2244_s19, 3 }
   0x7   : > { %p139_p3 = scmp.ne.s32.totalorder %s2185_s16, %s2181_s15  ;;  %p140_p4 = scmp.eq.s32.totalorder %s1442_s20, 3 }
   0x8   : > { %s2259_s24 = scalar_select %p121_p1, %s2189_s17, %s123_s22  }
   0x9   : > { %p2261_p5 = por %p134_p2, %p133_p0  ;;  %p2265_p6 = por %p140_p4, %p139_p3 }
   0xa   : > { %p1445_p7 = scmp.ge.s32.totalorder %s2193_s18, 1  ;;  %p185_p8 = scmp.lt.s32.totalorder %s2193_s18, 5 }
   0xc   : > { %p186_p9 = pnand %p1445_p7, %p185_p8 }
   0xd   : > { %p220_p10 = scmp.lt.s32.totalorder (!%p186_p9), %s2244_s19, 3  ;;  %v259_v0 = vld [vmem:[%s2784_s3] sm:$0xff] (!%p186_p9)  ;;  %v260_v1 = vld [vmem:[%s2784_s3 + $0x8] sm:$0xff] (!%p186_p9)  ;;  %v2195_v2 = vmov (!%p186_p9), 0   ;;  %vm1321_vm0 = vcmask (!%p186_p9), 7168   ;;  %v261_v14 = vld [vmem:[%s2784_s3 + $0x10] sm:$0xff] (!%p186_p9)  ;;  %v329_v32 = vlaneseq (!%p186_p9) }
   0xe   : > { %189 = sbr.rel (%p186_p9) target bundleno = 1544 (0x608), region = 36  ;;  %2112 = vset.pattern.permute.xlu1 (!%p186_p9), %v2195_v2  ;;  %2111 = vset.pattern.permute.xlu0 (!%p186_p9), %v2195_v2  ;;  %v1884_v3 = vpack.c.bf16 (!%p186_p9), %v260_v1, %v259_v0  ;;  %v262_v17 = vld [vmem:[%s2784_s3 + $0x18] sm:$0xff] (!%p186_p9)  ;;  %vm379_vm1 = vcmask (!%p186_p9), 261120   ;;  %v2196_v36 = vmov (!%p186_p9), 0.0   ;;  %vm621_vm10 = vcmask (!%p186_p9), 523264   ;;  %s218_s23 = sand.u32 (!%p186_p9), 1, %s2185_s16  }
   0xf   : > { %v1888_v21 = vpack.c.bf16 (!%p186_p9), %v262_v17, %v261_v14  ;;  %v330_v33 = vand.u32 (!%p186_p9), 127, %v329_v32  ;;  %s1486_s27 = sshll.u32 (!%p186_p9), %s2244_s19, 4  ;;  %s219_s29 = scalar_lea.vmem (!%p186_p9), [#allocation2], %s218_s23 }
  0x10   : > { %1885 = vmatprep.subr.bf16.mxu0 (!%p186_p9), %v1884_v3  ;;  %s1363_s30 = sshll.u32 (!%p186_p9), %s219_s29, 4  ;;  %s2739_s7 = scalar_lea.hbm (!%p186_p9), %s2785_s4, %s1486_s27  ;;  %s2741_s30 = int_to_ptr.vmem [resolvable:$true] %s1363_s30 }
  0x11   : > { %1887 = vmatpush3.bf16.msra.mxu0 (!%p186_p9), %v1884_v3  ;;  %s1351_s8 = scalar_lea.sflag (!%p186_p9), [#allocation3], %s218_s23 }
  0x12   : > { %1889 = vmatprep.subr.bf16.mxu0 (!%p186_p9), %v1888_v21 }
  0x15   : > { %s221_s5 = scalar_select %p220_p10, %s2244_s19, 3  ;;  %1891 = vmatpush3.bf16.msra.mxu0 %v1888_v21 }
  0x16   : > { %s2197_s19 = smov [#allocation2]  }
  0x17   : > { %s2279_s6 = sshll.u32 %s221_s5, 6  ;;  %s2135_s10 = sshll.u32 %s2197_s19, 4  ;;  %s2136_s10 = int_to_ptr.vmem [resolvable:$false] %s2135_s10 }
  0x18   : > { %s2285_s9 = scalar_lea.vmem %s2781_s0, %s2279_s6  ;;  %s2291_s12 = scalar_lea.vmem %s2782_s1, %s2279_s6 }
  0x19   : > { %v237_v4 = vld [vmem:[%s2285_s9 + $0x10] sm:$0xff]  ;;  %v235_v5 = vld [vmem:[%s2285_s9] sm:$0xff]  ;;  %v238_v6 = vld [vmem:[%s2285_s9 + $0x18] sm:$0xff]  ;;  %s2373_s28 = scalar_lea.vmem %s2783_s2, %s2279_s6  ;;  %s2137_s11 = scalar_lea.vmem %s2136_s10, 32 }
  0x1a   : > { %338 = vperm.xlu1 %2112, %v237_v4   ;;  %332 = vperm.xlu0 %2111, %v235_v5   ;;  %v236_v7 = vld [vmem:[%s2285_s9 + $0x8] sm:$0xff]  ;;  %v243_v8 = vld [vmem:[%s2291_s12] sm:$0xff]  ;;  %v245_v11 = vld [vmem:[%s2291_s12 + $0x10] sm:$0xff]  ;;  %p2138_p0 = scmp.lt.s32.totalorder %s2741_s30, %s2136_s10 }
  0x1b   : > { %v1322_v9 = vsel %vm1321_vm0, %v243_v8, 0.0  ;;  %v244_v10 = vld [vmem:[%s2291_s12 + $0x8] sm:$0xff]  ;;  %v1325_v13 = vsel %vm1321_vm0, %v245_v11, 0.0  ;;  %v246_v16 = vld [vmem:[%s2291_s12 + $0x18] sm:$0xff]  ;;  %v239_v19 = vld [vmem:[%s2285_s9 + $0x20] sm:$0xff] }
  0x1c   : > { %v1323_v12 = vsel %vm1321_vm0, %v244_v10, 0.0  ;;  %v240_v18 = vld [vmem:[%s2285_s9 + $0x28] sm:$0xff]  ;;  %v1327_v20 = vsel %vm1321_vm0, %v246_v16, 0.0  ;;  %v247_v23 = vld [vmem:[%s2291_s12 + $0x20] sm:$0xff]  ;;  %v242_v27 = vld [vmem:[%s2285_s9 + $0x38] sm:$0xff] }
  0x1d   : > { %v1324_v15 = vadd.f32 %v1323_v12, %v1322_v9  ;;  %v1329_v24 = vsel %vm1321_vm0, %v247_v23, 0.0  ;;  %v248_v26 = vld [vmem:[%s2291_s12 + $0x28] sm:$0xff]  ;;  %v241_v28 = vld [vmem:[%s2285_s9 + $0x30] sm:$0xff]  ;;  %v2362_v3 = vld [vmem:[%s2291_s12 + $0x38] sm:$0xff]  ;;  %s2131_s9 = scalar_lea.vmem %s2741_s30, 16 }
  0x1e   : > { %341 = vperm.xlu1 %2112, %v238_v6   ;;  %335 = vperm.xlu0 %2111, %v236_v7   ;;  %v1331_v29 = vsel %vm1321_vm0, %v248_v26, 0.0  ;;  %v2366_v4 = vld [vmem:[%s2291_s12 + $0x30] sm:$0xff]  ;;  %v251_v5 = vld [vmem:[%s2373_s28] sm:$0xff]  ;;  %p2132_p11 = scmp.ne.s32.totalorder %s2741_s30, %s2131_s9  ;;  %p2139_p1 = scmp.lt.s32.totalorder %s2137_s11, %s2131_s9 }
  0x1f   : > { %v1326_v22 = vadd.f32 %v1325_v13, %v1324_v15  ;;  %1784 = vmatprep.mubr.msk.f32.mxu1 %vm621_vm10, %v251_v5 }
  0x20   : > { %p2133_p12 = pnand %p2132_p11, %p2261_p5  ;;  %p2140_p2 = por %p2139_p1, %p2138_p0 }
  0x21   : > { %v1328_v25 = vadd.f32 %v1327_v20, %v1326_v22 }
  0x22   : > { %347 = vperm.xlu1 %2112, %v240_v18   ;;  %344 = vperm.xlu0 %2111, %v239_v19   ;;  %p2134_p13 = pneg %p2133_p12 }
  0x23   : > { %v1330_v30 = vadd.f32 %v1329_v24, %v1328_v25 }
  0x24   : > { %p2141_p3 = pnand %p2140_p2, %p2134_p13 }
  0x25   : > { %v2319_v31 = vadd.f32 %v1331_v29, %v1330_v30 }
  0x26   : > { %353 = vperm.xlu1 %2112, %v242_v27   ;;  %350 = vperm.xlu0 %2111, %v241_v28  }
  0x2a   : > { %575 = vperm.xlu1 %2112, %v243_v8   ;;  %580 = vperm.xlu0 %2111, %v244_v10  }
  0x2e   : > { %585 = vperm.xlu1 %2112, %v245_v11   ;;  %595 = vperm.xlu0 %2111, %v247_v23  }
  0x32   : > { %590 = vperm.xlu1 %2112, %v246_v16  }
  0x36   : > { %600 = vperm.xlu1 %2112, %v248_v26  }
  0x99   : > { %v339_v34 = vpop.permute.xlu1 %338  ;;  %v333_v35 = vpop.permute.xlu0 %332 }
  0x9a   : > { %vm355_vm2 = vcmp.eq.s32.totalorder %v333_v35, %v330_v33  ;;  %vm357_vm3 = vcmp.eq.s32.totalorder %v339_v34, %v330_v33 }
  0x9b   : > { %v1452_v37 = vsel %vm355_vm2, 1.0, %v2196_v36  ;;  %v1454_v40 = vsel %vm357_vm3, 1.0, %v2196_v36 }
  0x9c   : > { %1640 = vmatprep.mubr.msk.f32.mxu0 %vm379_vm1, %v1452_v37 }
  0x9d   : > { %v342_v38 = vpop.permute.xlu1 %341  ;;  %v336_v39 = vpop.permute.xlu0 %335 }
  0x9e   : > { %vm356_vm4 = vcmp.eq.s32.totalorder %v336_v39, %v330_v33  ;;  %vm358_vm5 = vcmp.eq.s32.totalorder %v342_v38, %v330_v33 }
  0x9f   : > { %v1453_v41 = vsel %vm356_vm4, 1.0, %v2196_v36  ;;  %v1455_v44 = vsel %vm358_vm5, 1.0, %v2196_v36 }
  0xa0   : > { %1641 = vmatmul.mubr.msk.f32.vlgmr.msra.gmra.mrb[0].mxu0 %vm379_vm1, %v1453_v41 }
  0xa1   : > { %v348_v42 = vpop.permute.xlu1 %347  ;;  %1643 = vmatprep.mubr.msk.f32.mxu0 %vm379_vm1, %v1454_v40  ;;  %v345_v43 = vpop.permute.xlu0 %344 }
  0xa2   : > { %vm359_vm6 = vcmp.eq.s32.totalorder %v345_v43, %v330_v33  ;;  %vm360_vm7 = vcmp.eq.s32.totalorder %v348_v42, %v330_v33 }
  0xa3   : > { %v1456_v45 = vsel %vm359_vm6, 1.0, %v2196_v36  ;;  %v1457_v48 = vsel %vm360_vm7, 1.0, %v2196_v36 }
  0xa4   : > { %1644 = vmatmul.mubr.msk.f32.gmra.mrb[2].mxu0 %vm379_vm1, %v1455_v44 }
  0xa5   : > { %v354_v46 = vpop.permute.xlu1 %353  ;;  %1646 = vmatprep.mubr.msk.f32.mxu0 %vm379_vm1, %v1456_v45  ;;  %v351_v47 = vpop.permute.xlu0 %350 }
  0xa6   : > { %vm361_vm8 = vcmp.eq.s32.totalorder %v351_v47, %v330_v33  ;;  %vm362_vm9 = vcmp.eq.s32.totalorder %v354_v46, %v330_v33 }
  0xa7   : > { %v1458_v49 = vsel %vm361_vm8, 1.0, %v2196_v36  ;;  %v1459_v50 = vsel %vm362_vm9, 1.0, %v2196_v36 }
  0xa8   : > { %1647 = vmatmul.mubr.msk.f32.gmra.mrb[4].mxu0 %vm379_vm1, %v1457_v48 }
  0xa9   : > { %1649 = vmatprep.mubr.msk.f32.mxu0 %vm379_vm1, %v1458_v49  ;;  %v2378_v6 = vpop.permute.xlu1 %575  ;;  %v2384_v9 = vpop.permute.xlu0 %580 }
  0xac   : > { %1650 = vmatmul.mubr.msk.f32.gmra.mrb[6].mxu0 %vm379_vm1, %v1459_v50 }
  0xad   : > { %1668 = vmatprep.mubr.msk.f32.mxu0 %vm621_vm10, %v251_v5  ;;  %v2380_v7 = vpop.permute.xlu1 %585  ;;  %v2388_v11 = vpop.permute.xlu0 %595  ;;  %v280_v5 = vld [vmem:[%s2784_s3 + $0xa8] sm:$0xff] }
  0xb1   : > { %v2382_v8 = vpop.permute.xlu1 %590 }
  0xb5   : > { %v2386_v10 = vpop.permute.xlu1 %600 }
 0x173   : > { %v2329_v51 = vpop.f32.mrb[0].mxu0 }
 0x174   : > { %v2331_v52 = vpop.f32.mrb[1].mxu0  ;;  %v510_v53 = vmul.f32 %v2329_v51, %v2329_v51 }
 0x175   : > { %v509_v54 = vmul.f32 %v2331_v52, %v2331_v52 }
 0x176   : > { %519 = vadd.xlane.f32.xlu1 %v510_v53 }
 0x177   : > { %517 = vadd.xlane.f32.xlu0 %v509_v54  ;;  %v2337_v55 = vpop.f32.mrb[2].mxu0 }
 0x178   : > { %v2339_v56 = vpop.f32.mrb[3].mxu0  ;;  %v512_v57 = vmul.f32 %v2337_v55, %v2337_v55 }
 0x179   : > { %v511_v60 = vmul.f32 %v2339_v56, %v2339_v56 }
 0x17b   : > { %523 = vadd.xlane.f32.xlu0 %v512_v57  ;;  %v2343_v58 = vpop.f32.mrb[4].mxu0 }
 0x17c   : > { %v2345_v59 = vpop.f32.mrb[5].mxu0  ;;  %v514_v0 = vmul.f32 %v2343_v58, %v2343_v58 }
 0x17d   : > { %v513_v61 = vmul.f32 %v2345_v59, %v2345_v59 }
 0x17f   : > { %521 = vadd.xlane.f32.xlu0 %v511_v60  ;;  %525 = vadd.xlane.f32.xlu1 %v513_v61  ;;  %v2351_v62 = vpop.f32.mrb[6].mxu0 }
 0x180   : > { %v2353_v63 = vpop.f32.mrb[7].mxu0  ;;  %v516_v2 = vmul.f32 %v2351_v62, %v2351_v62 }
 0x181   : > { %v515_v1 = vmul.f32 %v2353_v63, %v2353_v63 }
 0x183   : > { %527 = vadd.xlane.f32.xlu0 %v514_v0  ;;  %529 = vadd.xlane.f32.xlu1 %v515_v1 }
 0x187   : > { %531 = vadd.xlane.f32.xlu0 %v516_v2 }
 0x194   : > { %610 = vperm.xlu1 %2112, %v2362_v3  }
 0x19d   : > { %605 = vperm.xlu0 %2111, %v2366_v4  }
 0x203   : > { %v520_v12 = vpop.xlane.xlu1 %519 }
 0x204   : > { %v534_v13 = vmax.f32 %v520_v12, 1e-30  ;;  %v518_v14 = vpop.xlane.xlu0 %517  ;;  %vm550_vm11 = vcmp.gt.f32.partialorder %v520_v12, 1.0 }
 0x205   : > { %v533_v15 = vmax.f32 %v518_v14, 1e-30  ;;  %vm549_vm12 = vcmp.gt.f32.partialorder %v518_v14, 1.0  ;;  %v281_v14 = vld [vmem:[%s2784_s3 + $0xb0] sm:$0xff] }
 0x206   : > { %2113 = vrsqrt.f32 %v534_v13 }
 0x207   : > { %2115 = vrsqrt.f32 %v533_v15  ;;  %v282_v15 = vld [vmem:[%s2784_s3 + $0xb8] sm:$0xff] }
 0x208   : > { %v524_v16 = vpop.xlane.xlu0 %523 }
 0x209   : > { %v536_v17 = vmax.f32 %v524_v16, 1e-30  ;;  %vm552_vm13 = vcmp.gt.f32.partialorder %v524_v16, 1.0  ;;  %v2447_v16 = vld [vmem:[%s2373_s28 + $0x8] sm:$0xff] }
 0x20b   : > { %2117 = vrsqrt.f32 %v536_v17  ;;  %v2450_v17 = vld [vmem:[%s2373_s28 + $0x10] sm:$0xff] }
 0x20c   : > { %v526_v18 = vpop.xlane.xlu1 %525  ;;  %v522_v19 = vpop.xlane.xlu0 %521 }
 0x20d   : > { %v537_v20 = vmax.f32 %v526_v18, 1e-30  ;;  %v535_v21 = vmax.f32 %v522_v19, 1e-30  ;;  %vm553_vm14 = vcmp.gt.f32.partialorder %v526_v18, 1.0  ;;  %vm551_vm15 = vcmp.gt.f32.partialorder %v522_v19, 1.0 }
 0x20e   : > { %v1912_v18 = vpack.c.bf16 %v282_v15, %v281_v14  ;;  %v283_v19 = vld [vmem:[%s2784_s3 + $0xc0] sm:$0xff] }
 0x20f   : > { %2119 = vrsqrt.f32 %v537_v20  ;;  %v284_v20 = vld [vmem:[%s2784_s3 + $0xc8] sm:$0xff]  ;;  %v271_v15 = vld [vmem:[%s2784_s3 + $0x60] sm:$0xff] }
 0x210   : > { %v2114_v22 = vpop.eup %2113  ;;  %2121 = vrsqrt.f32 %v535_v21  ;;  %v530_v23 = vpop.xlane.xlu1 %529  ;;  %v2463_v21 = vld [vmem:[%s2373_s28 + $0x18] sm:$0xff] }
 0x211   : > { %v528_v24 = vpop.xlane.xlu0 %527  ;;  %v2116_v25 = vpop.eup %2115  ;;  %v558_v26 = vsel %vm550_vm11, %v2114_v22, 1.0  ;;  %v539_v27 = vmax.f32 %v530_v23, 1e-30  ;;  %vm555_vm1 = vcmp.gt.f32.partialorder %v530_v23, 1.0  ;;  %v2466_v22 = vld [vmem:[%s2373_s28 + $0x20] sm:$0xff]  ;;  %v1916_v23 = vpack.c.bf16 %v284_v20, %v283_v19 }
 0x212   : > { %v538_v28 = vmax.f32 %v528_v24, 1e-30  ;;  %v566_v29 = vmul.f32 %v2329_v51, %v558_v26  ;;  %v557_v30 = vsel %vm549_vm12, %v2116_v25, 1.0  ;;  %vm554_vm2 = vcmp.gt.f32.partialorder %v528_v24, 1.0  ;;  %v285_v24 = vld [vmem:[%s2784_s3 + $0xd0] sm:$0xff]  ;;  %v286_v25 = vld [vmem:[%s2784_s3 + $0xd8] sm:$0xff] }
 0x213   : > { %v565_v32 = vmul.f32 %v557_v30, %v2331_v52  ;;  %2123 = vrsqrt.f32 %v539_v27  ;;  %v2479_v26 = vld [vmem:[%s2373_s28 + $0x28] sm:$0xff]  ;;  %v2482_v27 = vld [vmem:[%s2373_s28 + $0x30] sm:$0xff] }
 0x214   : > { %v2393_v33 = vmul.f32 %v2384_v9, %v566_v29  ;;  %2125 = vrsqrt.f32 %v538_v28  ;;  %v1920_v28 = vpack.c.bf16 %v286_v25, %v285_v24  ;;  %v287_v29 = vld [vmem:[%s2784_s3 + $0xe0] sm:$0xff]  ;;  %v288_v30 = vld [vmem:[%s2784_s3 + $0xe8] sm:$0xff]  ;;  %v273_v24 = vld [vmem:[%s2784_s3 + $0x70] sm:$0xff] }
 0x215   : > { %v532_v34 = vpop.xlane.xlu0 %531  ;;  %v2118_v35 = vpop.eup %2117  ;;  %v2396_v36 = vmul.f32 %v2378_v6, %v565_v32  ;;  %v2495_v32 = vld [vmem:[%s2373_s28 + $0x38] sm:$0xff] }
 0x216   : > { %v540_v37 = vmax.f32 %v532_v34, 1e-30  ;;  %v560_v38 = vsel %vm552_vm13, %v2118_v35, 1.0  ;;  %vm556_vm3 = vcmp.gt.f32.partialorder %v532_v34, 1.0  ;;  %v1924_v34 = vpack.c.bf16 %v288_v30, %v287_v29  ;;  %v289_v35 = vld [vmem:[%s2784_s3 + $0xf0] sm:$0xff]  ;;  %v274_v25 = vld [vmem:[%s2784_s3 + $0x78] sm:$0xff] }
 0x217   : > { %v1892_v39 = vpack.c.bf16 %v2393_v33, %v2396_v36  ;;  %v568_v42 = vmul.f32 %v2337_v55, %v560_v38  ;;  %v275_v29 = vld [vmem:[%s2784_s3 + $0x80] sm:$0xff]  ;;  %v276_v30 = vld [vmem:[%s2784_s3 + $0x88] sm:$0xff] }
 0x218   : > { %2127 = vrsqrt.f32 %v540_v37  ;;  %v290_v37 = vld [vmem:[%s2784_s3 + $0xf8] sm:$0xff] }
 0x219   : > { %v2120_v40 = vpop.eup %2119  ;;  %1893 = vmatprep.subr.bf16.mxu0 %v1892_v39  ;;  %v2403_v48 = vmul.f32 %v2382_v8, %v568_v42  ;;  %v1928_v38 = vpack.c.bf16 %v290_v37, %v289_v35  ;;  %v293_v42 = vld [vmem:[%s2784_s3 + $0x110] sm:$0xff] }
 0x21a   : > { %v2122_v41 = vpop.eup %2121  ;;  %1895 = vmatpush3.bf16.msra.mxu0 %v1892_v39  ;;  %v561_v43 = vsel %vm553_vm14, %v2120_v40, 1.0  ;;  %v291_v39 = vld [vmem:[%s2784_s3 + $0x100] sm:$0xff]  ;;  %v292_v40 = vld [vmem:[%s2784_s3 + $0x108] sm:$0xff]  ;;  %v277_v35 = vld [vmem:[%s2784_s3 + $0x90] sm:$0xff] }
 0x21b   : > { %v559_v44 = vsel %vm551_vm15, %v2122_v41, 1.0  ;;  %v569_v49 = vmul.f32 %v561_v43, %v2345_v59  ;;  %v1932_v41 = vpack.c.bf16 %v292_v40, %v291_v39  ;;  %v294_v43 = vld [vmem:[%s2784_s3 + $0x118] sm:$0xff] }
 0x21c   : > { %v567_v45 = vmul.f32 %v559_v44, %v2339_v56  ;;  %v2422_v0 = vpop.permute.xlu0 %605  ;;  %v1936_v44 = vpack.c.bf16 %v294_v43, %v293_v42 }
 0x21d   : > { %v2124_v46 = vpop.eup %2123  ;;  %v2414_v57 = vmul.f32 %v2388_v11, %v569_v49  ;;  %v265_v49 = vld [vmem:[%s2784_s3 + $0x30] sm:$0xff] }
 0x21e   : > { %v2126_v47 = vpop.eup %2125  ;;  %v2407_v50 = vmul.f32 %v2380_v7, %v567_v45  ;;  %v563_v51 = vsel %vm555_vm1, %v2124_v46, 1.0  ;;  %v263_v45 = vld [vmem:[%s2784_s3 + $0x20] sm:$0xff]  ;;  %v264_v46 = vld [vmem:[%s2784_s3 + $0x28] sm:$0xff] }
 0x21f   : > { %v562_v52 = vsel %vm554_vm2, %v2126_v47, 1.0  ;;  %v571_v56 = vmul.f32 %v563_v51, %v2353_v63  ;;  %v1940_v47 = vpack.c.bf16 %v264_v46, %v263_v45  ;;  %v266_v51 = vld [vmem:[%s2784_s3 + $0x38] sm:$0xff] }
 0x220   : > { %v570_v53 = vmul.f32 %v2343_v58, %v562_v52  ;;  %v1896_v54 = vpack.c.bf16 %v2403_v48, %v2407_v50  ;;  %v2420_v58 = vpop.permute.xlu1 %610 }
 0x221   : > { %v2430_v2 = vmul.f32 %v2422_v0, %v571_v56  ;;  %v268_v56 = vld [vmem:[%s2784_s3 + $0x48] sm:$0xff] }
 0x222   : > { %v2128_v55 = vpop.eup %2127  ;;  %v2417_v60 = vmul.f32 %v2386_v10, %v570_v53  ;;  %1897 = vmatprep.subr.bf16.mxu0 %v1896_v54 }
 0x223   : > { %v564_v59 = vsel %vm556_vm3, %v2128_v55, 1.0  ;;  %1899 = vmatpush3.bf16.msra.mxu0 %v1896_v54  ;;  %v1944_v54 = vpack.c.bf16 %v266_v51, %v265_v49  ;;  %v267_v55 = vld [vmem:[%s2784_s3 + $0x40] sm:$0xff] }
 0x224   : > { %v572_v61 = vmul.f32 %v2351_v62, %v564_v59  ;;  %v1900_v63 = vpack.c.bf16 %v2417_v60, %v2414_v57  ;;  %v279_v62 = vld [vmem:[%s2784_s3 + $0xa0] sm:$0xff] }
 0x225   : > { %v1908_v13 = vpack.c.bf16 %v280_v5, %v279_v62  ;;  %v269_v62 = vld [vmem:[%s2784_s3 + $0x50] sm:$0xff]  ;;  %v270_v5 = vld [vmem:[%s2784_s3 + $0x58] sm:$0xff] }
 0x226   : > { %v2427_v1 = vmul.f32 %v2420_v58, %v572_v61  ;;  %1901 = vmatprep.subr.bf16.mxu0 %v1900_v63  ;;  %v1952_v14 = vpack.c.bf16 %v270_v5, %v269_v62  ;;  %v315_v62 = vld [vmem:[%s2784_s3 + $0x1c0] sm:$0xff]  ;;  %v316_v5 = vld [vmem:[%s2784_s3 + $0x1c8] sm:$0xff] }
 0x227   : > { %1903 = vmatpush3.bf16.msra.mxu0 %v1900_v63  ;;  %v1948_v63 = vpack.c.bf16 %v268_v56, %v267_v55 }
 0x228   : > { %v1904_v12 = vpack.c.bf16 %v2427_v1, %v2430_v2 }
 0x22a   : > { %1905 = vmatprep.subr.bf16.mxu0 %v1904_v12 }
 0x22b   : > { %1907 = vmatpush3.bf16.msra.mxu0 %v1904_v12 }
 0x22c   : > { %1909 = vmatprep.subr.bf16.mxu0 %v1908_v13 }
 0x22e   : > { %1669 = vmatmul.mubr.msk.f32.vlgmr.msra.gmra.mrb[8].mxu0 %vm621_vm10, %v2447_v16 }
 0x22f   : > { %1671 = vmatprep.mubr.msk.f32.mxu0 %vm621_vm10, %v2450_v17  ;;  %1911 = vmatpush3.bf16.msra.mxu0 %v1908_v13 }
 0x230   : > { %1913 = vmatprep.subr.bf16.mxu0 %v1912_v18 }
 0x232   : > { %1672 = vmatmul.mubr.msk.f32.gmra.mrb[10].mxu0 %vm621_vm10, %v2463_v21 }
 0x233   : > { %1674 = vmatprep.mubr.msk.f32.mxu0 %vm621_vm10, %v2466_v22  ;;  %1915 = vmatpush3.bf16.msra.mxu0 %v1912_v18  ;;  %v272_v18 = vld [vmem:[%s2784_s3 + $0x68] sm:$0xff] }
 0x234   : > { %1917 = vmatprep.subr.bf16.mxu0 %v1916_v23 }
 0x236   : > { %1675 = vmatmul.mubr.msk.f32.gmra.mrb[12].mxu0 %vm621_vm10, %v2479_v26 }
 0x237   : > { %1677 = vmatprep.mubr.msk.f32.mxu0 %vm621_vm10, %v2482_v27  ;;  %1919 = vmatpush3.bf16.msra.mxu0 %v1916_v23  ;;  %v1956_v23 = vpack.c.bf16 %v272_v18, %v271_v15  ;;  %v320_v15 = vld [vmem:[%s2784_s3 + $0x1e8] sm:$0xff]  ;;  %v322_v18 = vld [vmem:[%s2784_s3 + $0x1f8] sm:$0xff] }
 0x238   : > { %1921 = vmatprep.subr.bf16.mxu0 %v1920_v28 }
 0x23a   : > { %1678 = vmatmul.mubr.msk.f32.gmra.mrb[14].mxu0 %vm621_vm10, %v2495_v32 }
 0x23b   : > { %1923 = vmatpush3.bf16.msra.mxu0 %v1920_v28  ;;  %v1960_v28 = vpack.c.bf16 %v274_v25, %v273_v24  ;;  %v295_v25 = vld [vmem:[%s2784_s3 + $0x120] sm:$0xff] }
 0x23c   : > { %1925 = vmatprep.subr.bf16.mxu0 %v1924_v34 }
 0x23f   : > { %1927 = vmatpush3.bf16.msra.mxu0 %v1924_v34  ;;  %v1964_v34 = vpack.c.bf16 %v276_v30, %v275_v29  ;;  %v1333_v30 = vsel %vm1321_vm0, %v2366_v4, 0.0 }
 0x240   : > { %1929 = vmatprep.subr.bf16.mxu0 %v1928_v38 }
 0x243   : > { %1931 = vmatpush3.bf16.msra.mxu0 %v1928_v38  ;;  %v1476_v38 = vld [vmem:[%s2784_s3 + $0x220] ss:$0 sm:$0xff] }
 0x244   : > { %1933 = vmatprep.subr.bf16.mxu0 %v1932_v41 }
 0x247   : > { %1935 = vmatpush3.bf16.msra.mxu0 %v1932_v41 }
 0x248   : > { %1937 = vmatprep.subr.bf16.mxu0 %v1936_v44 }
 0x24b   : > { %1939 = vmatpush3.bf16.msra.mxu0 %v1936_v44 }
 0x24c   : > { %1941 = vmatprep.subr.bf16.mxu0 %v1940_v47 }
 0x301   : > { %v1670_v52 = vpop.f32.mrb[8].mxu0 }
 0x302   : > { %v712_v53 = vpop.f32.mrb[9].mxu0 }
 0x303   : > { %1712 = vmatprep.mubr.f32.mxu0 %v712_v53  ;;  %v312_v53 = vld [vmem:[%s2784_s3 + $0x1a8] sm:$0xff] }
 0x304   : > { %1713 = vmatmul.mubr.f32.vlgmr.msra.gmra.mrb[16].mxu0 %v1670_v52  ;;  %v311_v52 = vld [vmem:[%s2784_s3 + $0x1a0] sm:$0xff] }
 0x305   : > { %1943 = vmatpush3.bf16.msra.mxu0 %v1940_v47  ;;  %v1673_v59 = vpop.f32.mrb[10].mxu0  ;;  %v1988_v56 = vpack.c.bf16 %v312_v53, %v311_v52  ;;  %v304_v52 = vld [vmem:[%s2784_s3 + $0x168] sm:$0xff] }
 0x306   : > { %v722_v61 = vpop.f32.mrb[11].mxu0  ;;  %1945 = vmatprep.subr.bf16.mxu0 %v1944_v54 }
 0x307   : > { %1715 = vmatprep.mubr.f32.mxu0 %v722_v61  ;;  %v314_v61 = vld [vmem:[%s2784_s3 + $0x1b8] sm:$0xff] }
 0x308   : > { %1716 = vmatmul.mubr.f32.gmra.mrb[18].mxu0 %v1673_v59  ;;  %v313_v59 = vld [vmem:[%s2784_s3 + $0x1b0] sm:$0xff] }
 0x309   : > { %1947 = vmatpush3.bf16.msra.mxu0 %v1944_v54  ;;  %v1676_v12 = vpop.f32.mrb[12].mxu0 }
 0x30a   : > { %v732_v13 = vpop.f32.mrb[13].mxu0  ;;  %1949 = vmatprep.subr.bf16.mxu0 %v1948_v63 }
 0x30b   : > { %1718 = vmatprep.mubr.f32.mxu0 %v732_v13  ;;  %v317_v13 = vld [vmem:[%s2784_s3 + $0x1d0] sm:$0xff] }
 0x30c   : > { %1719 = vmatmul.mubr.f32.gmra.mrb[20].mxu0 %v1676_v12  ;;  %v1996_v12 = vpack.c.bf16 %v316_v5, %v315_v62  ;;  %v307_v62 = vld [vmem:[%s2784_s3 + $0x180] sm:$0xff]  ;;  %v308_v5 = vld [vmem:[%s2784_s3 + $0x188] sm:$0xff] }
 0x30d   : > { %1951 = vmatpush3.bf16.msra.mxu0 %v1948_v63  ;;  %v1679_v19 = vpop.f32.mrb[14].mxu0  ;;  %v1992_v63 = vpack.c.bf16 %v314_v61, %v313_v59  ;;  %v305_v59 = vld [vmem:[%s2784_s3 + $0x170] sm:$0xff]  ;;  %v306_v61 = vld [vmem:[%s2784_s3 + $0x178] sm:$0xff] }
 0x30e   : > { %v742_v20 = vpop.f32.mrb[15].mxu0  ;;  %1953 = vmatprep.subr.bf16.mxu0 %v1952_v14 }
 0x30f   : > { %1721 = vmatprep.mubr.f32.mxu0 %v742_v20 }
 0x310   : > { %1722 = vmatmul.mubr.f32.gmra.mrb[22].mxu0 %v1679_v19  ;;  %v324_v19 = vld [vmem:[%s2784_s3 + $0x208] sm:$0xff] }
 0x311   : > { %1955 = vmatpush3.bf16.msra.mxu0 %v1952_v14  ;;  %1756 = vmatprep.mubr.f32.mxu0 %v2396_v36  ;;  %v278_v36 = vld [vmem:[%s2784_s3 + $0x98] sm:$0xff] }
 0x312   : > { %1957 = vmatprep.subr.bf16.mxu0 %v1956_v23  ;;  %v1968_v37 = vpack.c.bf16 %v278_v36, %v277_v35  ;;  %v318_v14 = vld [vmem:[%s2784_s3 + $0x1d8] sm:$0xff]  ;;  %v1335_v35 = vsel %vm1321_vm0, %v2362_v3, 0.0  ;;  %v300_v3 = vld [vmem:[%s2784_s3 + $0x148] sm:$0xff] }
 0x315   : > { %1959 = vmatpush3.bf16.msra.mxu0 %v1956_v23  ;;  %v325_v23 = vld [vmem:[%s2784_s3 + $0x210] sm:$0xff] }
 0x316   : > { %1961 = vmatprep.subr.bf16.mxu0 %v1960_v28 }
 0x319   : > { %1963 = vmatpush3.bf16.msra.mxu0 %v1960_v28  ;;  %v296_v28 = vld [vmem:[%s2784_s3 + $0x128] sm:$0xff] }
 0x31a   : > { %1965 = vmatprep.subr.bf16.mxu0 %v1964_v34  ;;  %v2020_v29 = vpack.c.bf16 %v296_v28, %v295_v25 }
 0x31d   : > { %1967 = vmatpush3.bf16.msra.mxu0 %v1964_v34  ;;  %v1334_v34 = vadd.f32 %v1333_v30, %v2319_v31  ;;  %v299_v31 = vld [vmem:[%s2784_s3 + $0x140] sm:$0xff] }
 0x31e   : > { %1969 = vmatprep.subr.bf16.mxu0 %v1968_v37 }
 0x31f   : > { %v1336_v36 = vadd.f32 %v1335_v35, %v1334_v34 }
 0x321   : > { %1971 = vmatpush3.bf16.msra.mxu0 %v1968_v37  ;;  %1337 = vadd.xlane.f32.xlu0 %v1336_v36  ;;  %v297_v37 = vld [vmem:[%s2784_s3 + $0x130] sm:$0xff] }
 0x324   : > { %1757 = vmatmul.mubr.f32.vlgmr.msra.gmra.mrb[16].mxu0 %v2393_v33 }
 0x325   : > { %1759 = vmatprep.mubr.f32.mxu0 %v2407_v50 }
 0x328   : > { %1760 = vmatmul.mubr.f32.gmra.mrb[18].mxu0 %v2403_v48 }
 0x329   : > { %1762 = vmatprep.mubr.f32.mxu0 %v2414_v57 }
 0x32c   : > { %1763 = vmatmul.mubr.f32.gmra.mrb[20].mxu0 %v2417_v60 }
 0x32d   : > { %1765 = vmatprep.mubr.f32.mxu0 %v2430_v2 }
 0x330   : > { %1766 = vmatmul.mubr.f32.gmra.mrb[22].mxu0 %v2427_v1 }
 0x3f7   : > { %v1758_v39 = vpop.f32.mrb[16].mxu0 }
 0x3f8   : > { %v2576_v40 = vadd.f32 %v1758_v39, %v1476_v38  ;;  %v922_v33 = vpop.f32.mrb[17].mxu0 }
 0x3f9   : > { %v2578_v41 = vadd.f32 %v1476_v38, %v922_v33 }
 0x3fb   : > { %v1761_v50 = vpop.f32.mrb[18].mxu0  ;;  %v1972_v48 = vpack.c.bf16 %v2576_v40, %v2578_v41 }
 0x3fc   : > { %v2582_v57 = vadd.f32 %v1761_v50, %v1476_v38  ;;  %v932_v60 = vpop.f32.mrb[19].mxu0 }
 0x3fd   : > { %v2584_v2 = vadd.f32 %v1476_v38, %v932_v60  ;;  %1973 = vmatprep.subr.bf16.mxu1 %v1972_v48  ;;  %v2028_v60 = vpack.c.bf16 %v300_v3, %v299_v31 }
 0x3fe   : > { %1975 = vmatpush3.bf16.msra.mxu1 %v1972_v48 }
 0x3ff   : > { %v1976_v1 = vpack.c.bf16 %v2582_v57, %v2584_v2  ;;  %v1764_v42 = vpop.f32.mrb[20].mxu0 }
 0x400   : > { %v2588_v43 = vadd.f32 %v1764_v42, %v1476_v38  ;;  %v942_v44 = vpop.f32.mrb[21].mxu0  ;;  %v302_v42 = vld [vmem:[%s2784_s3 + $0x158] sm:$0xff] }
 0x401   : > { %v2590_v45 = vadd.f32 %v1476_v38, %v942_v44  ;;  %1977 = vmatprep.subr.bf16.mxu1 %v1976_v1 }
 0x402   : > { %1979 = vmatpush3.bf16.msra.mxu1 %v1976_v1  ;;  %v301_v1 = vld [vmem:[%s2784_s3 + $0x150] sm:$0xff] }
 0x403   : > { %v1980_v46 = vpack.c.bf16 %v2588_v43, %v2590_v45  ;;  %v1767_v47 = vpop.f32.mrb[22].mxu0 }
 0x404   : > { %v2594_v49 = vadd.f32 %v1767_v47, %v1476_v38  ;;  %v952_v51 = vpop.f32.mrb[23].mxu0  ;;  %v2032_v47 = vpack.c.bf16 %v302_v42, %v301_v1 }
 0x405   : > { %v2602_v54 = vadd.f32 %v1476_v38, %v952_v51  ;;  %1981 = vmatprep.subr.bf16.mxu1 %v1980_v46  ;;  %v298_v38 = vld [vmem:[%s2784_s3 + $0x138] sm:$0xff]  ;;  %v303_v51 = vld [vmem:[%s2784_s3 + $0x160] sm:$0xff] }
 0x406   : > { %1983 = vmatpush3.bf16.msra.mxu1 %v1980_v46  ;;  %v2024_v50 = vpack.c.bf16 %v298_v38, %v297_v37 }
 0x407   : > { %v1984_v55 = vpack.c.bf16 %v2594_v49, %v2602_v54 }
 0x409   : > { %1985 = vmatprep.subr.bf16.mxu1 %v1984_v55 }
 0x40a   : > { %1987 = vmatpush3.bf16.msra.mxu1 %v1984_v55 }
 0x40b   : > { %1989 = vmatprep.subr.bf16.mxu1 %v1988_v56 }
 0x40d   : > { %1785 = vmatmul.mubr.msk.f32.vlgmr.msra.gmra.mrb[0].mxu1 %vm621_vm10, %v2447_v16  ;;  %v2000_v16 = vpack.c.bf16 %v318_v14, %v317_v13  ;;  %v309_v13 = vld [vmem:[%s2784_s3 + $0x190] sm:$0xff] }
 0x40e   : > { %1787 = vmatprep.mubr.msk.f32.mxu1 %vm621_vm10, %v2450_v17  ;;  %1991 = vmatpush3.bf16.msra.mxu1 %v1988_v56  ;;  %v319_v17 = vld [vmem:[%s2784_s3 + $0x1e0] sm:$0xff]  ;;  %v2036_v56 = vpack.c.bf16 %v304_v52, %v303_v51 }
 0x40f   : > { %1993 = vmatprep.subr.bf16.mxu1 %v1992_v63 }
 0x411   : > { %1788 = vmatmul.mubr.msk.f32.gmra.mrb[2].mxu1 %vm621_vm10, %v2463_v21  ;;  %v2004_v21 = vpack.c.bf16 %v320_v15, %v319_v17 }
 0x412   : > { %1790 = vmatprep.mubr.msk.f32.mxu1 %vm621_vm10, %v2466_v22  ;;  %1995 = vmatpush3.bf16.msra.mxu1 %v1992_v63  ;;  %v321_v22 = vld [vmem:[%s2784_s3 + $0x1f0] sm:$0xff]  ;;  %v2040_v63 = vpack.c.bf16 %v306_v61, %v305_v59 }
 0x413   : > { %1997 = vmatprep.subr.bf16.mxu1 %v1996_v12 }
 0x415   : > { %1791 = vmatmul.mubr.msk.f32.gmra.mrb[4].mxu1 %vm621_vm10, %v2479_v26  ;;  %v2008_v26 = vpack.c.bf16 %v322_v18, %v321_v22 }
 0x416   : > { %1793 = vmatprep.mubr.msk.f32.mxu1 %vm621_vm10, %v2482_v27  ;;  %1999 = vmatpush3.bf16.msra.mxu1 %v1996_v12  ;;  %v323_v27 = vld [vmem:[%s2784_s3 + $0x200] sm:$0xff]  ;;  %v2044_v12 = vpack.c.bf16 %v308_v5, %v307_v62 }
 0x417   : > { %2001 = vmatprep.subr.bf16.mxu1 %v2000_v16  ;;  %v2012_v20 = vpack.c.bf16 %v324_v19, %v323_v27 }
 0x419   : > { %1794 = vmatmul.mubr.msk.f32.gmra.mrb[6].mxu1 %vm621_vm10, %v2495_v32  ;;  %v326_v32 = vld [vmem:[%s2784_s3 + $0x218] sm:$0xff] }
 0x41a   : > { %2003 = vmatpush3.bf16.msra.mxu1 %v2000_v16  ;;  %v2016_v24 = vpack.c.bf16 %v326_v32, %v325_v23  ;;  %v1338_v16 = vpop.xlane.xlu0 %1337 }
 0x41b   : > { %2005 = vmatprep.subr.bf16.mxu1 %v2004_v21  ;;  %v1339_v17 = vrot.slane %v1338_v16, 4 }
 0x41d   : > { %v1340_v15 = vadd.f32 %v1339_v17, %v1338_v16 }
 0x41e   : > { %2007 = vmatpush3.bf16.msra.mxu1 %v2004_v21 }
 0x41f   : > { %2009 = vmatprep.subr.bf16.mxu1 %v2008_v26  ;;  %v1341_v21 = vrot.slane %v1340_v15, 2 }
 0x421   : > { %v1342_v22 = vadd.f32 %v1341_v21, %v1340_v15 }
 0x422   : > { %2011 = vmatpush3.bf16.msra.mxu1 %v2008_v26 }
 0x423   : > { %2013 = vmatprep.subr.bf16.mxu1 %v2012_v20  ;;  %v1343_v18 = vrot.slane %v1342_v22, 1 }
 0x425   : > { %v1344_v26 = vadd.f32 %v1343_v18, %v1342_v22 }
 0x426   : > { %2015 = vmatpush3.bf16.msra.mxu1 %v2012_v20 }
 0x427   : > { %2017 = vmatprep.subr.bf16.mxu1 %v2016_v24  ;;  %2068 = vpush %v1344_v26 }
 0x42a   : > { %2019 = vmatpush3.bf16.msra.mxu1 %v2016_v24 }
 0x42b   : > { %2021 = vmatprep.subr.bf16.mxu1 %v2020_v29 }
 0x458   : > { %s2069_s22 = spop %2068 }
 0x4e0   : > { %v1786_v39 = vpop.f32.mrb[0].mxu1 }
 0x4e1   : > { %v1039_v33 = vpop.f32.mrb[1].mxu1 }
 0x4e2   : > { %1828 = vmatprep.mubr.f32.mxu1 %v1039_v33 }
 0x4e3   : > { %1829 = vmatmul.mubr.f32.vlgmr.msra.gmra.mrb[8].mxu1 %v1786_v39 }
 0x4e4   : > { %2023 = vmatpush3.bf16.msra.mxu1 %v2020_v29  ;;  %v1789_v4 = vpop.f32.mrb[2].mxu1 }
 0x4e5   : > { %v1049_v48 = vpop.f32.mrb[3].mxu1  ;;  %2025 = vmatprep.subr.bf16.mxu1 %v2024_v50 }
 0x4e6   : > { %1831 = vmatprep.mubr.f32.mxu1 %v1049_v48  ;;  %v1346_v48 = vstv %s2069_s22 }
 0x4e7   : > { %1832 = vmatmul.mubr.f32.gmra.mrb[10].mxu1 %v1789_v4  ;;  %2129 = vrcp.f32 %v1346_v48 }
 0x4e8   : > { %2027 = vmatpush3.bf16.msra.mxu1 %v2024_v50  ;;  %v1792_v44 = vpop.f32.mrb[4].mxu1 }
 0x4e9   : > { %v1059_v46 = vpop.f32.mrb[5].mxu1  ;;  %2029 = vmatprep.subr.bf16.mxu1 %v2028_v60 }
 0x4ea   : > { %1834 = vmatprep.mubr.f32.mxu1 %v1059_v46 }
 0x4eb   : > { %1835 = vmatmul.mubr.f32.gmra.mrb[12].mxu1 %v1792_v44 }
 0x4ec   : > { %2031 = vmatpush3.bf16.msra.mxu1 %v2028_v60  ;;  %v1795_v53 = vpop.f32.mrb[6].mxu1 }
 0x4ed   : > { %v1069_v55 = vpop.f32.mrb[7].mxu1  ;;  %2033 = vmatprep.subr.bf16.mxu1 %v2032_v47 }
 0x4ee   : > { %1837 = vmatprep.mubr.f32.mxu1 %v1069_v55 }
 0x4ef   : > { %1838 = vmatmul.mubr.f32.gmra.mrb[14].mxu1 %v1795_v53 }
 0x4f0   : > { %2035 = vmatpush3.bf16.msra.mxu1 %v2032_v47  ;;  %1872 = vmatprep.mubr.f32.mxu1 %v2578_v41  ;;  %v310_v41 = vld [vmem:[%s2784_s3 + $0x198] sm:$0xff] }
 0x4f1   : > { %2037 = vmatprep.subr.bf16.mxu1 %v2036_v56  ;;  %v2048_v14 = vpack.c.bf16 %v310_v41, %v309_v13 }
 0x4f4   : > { %2039 = vmatpush3.bf16.msra.mxu1 %v2036_v56 }
 0x4f5   : > { %2041 = vmatprep.subr.bf16.mxu1 %v2040_v63 }
 0x4f8   : > { %2043 = vmatpush3.bf16.msra.mxu1 %v2040_v63 }
 0x4f9   : > { %2045 = vmatprep.subr.bf16.mxu1 %v2044_v12 }
 0x4fc   : > { %2047 = vmatpush3.bf16.msra.mxu1 %v2044_v12 }
 0x4fd   : > { %2049 = vmatprep.subr.bf16.mxu1 %v2048_v14 }
 0x500   : > { %2051 = vmatpush3.bf16.msra.mxu1 %v2048_v14 }
 0x503   : > { %1873 = vmatmul.mubr.f32.vlgmr.msra.gmra.mrb[8].mxu1 %v2576_v40  ;;  %v1485_v40 = vld [vmem:[%s2784_s3 + $0x228] ss:$0 sm:$0xff] }
 0x504   : > { %1875 = vmatprep.mubr.f32.mxu1 %v2584_v2 }
 0x507   : > { %1876 = vmatmul.mubr.f32.gmra.mrb[10].mxu1 %v2582_v57 }
 0x508   : > { %1878 = vmatprep.mubr.f32.mxu1 %v2590_v45 }
 0x50b   : > { %1879 = vmatmul.mubr.f32.gmra.mrb[12].mxu1 %v2588_v43 }
 0x50c   : > { %1881 = vmatprep.mubr.f32.mxu1 %v2602_v54 }
 0x50f   : > { %1882 = vmatmul.mubr.f32.gmra.mrb[14].mxu1 %v2594_v49 }
 0x5d6   : > { %v1874_v57 = vpop.f32.mrb[8].mxu1 }
 0x5d7   : > { %v1293_v2 = vadd.f32 %v1874_v57, %v1485_v40  ;;  %v1249_v45 = vpop.f32.mrb[9].mxu1 }
 0x5d8   : > { %v1292_v43 = vadd.f32 %v1485_v40, %v1249_v45 }
 0x5d9   : > { %v1301_v54 = vmul.f32 %v1293_v2, %v2384_v9 }
 0x5da   : > { %v1300_v49 = vmul.f32 %v1292_v43, %v2378_v6  ;;  %v1877_v27 = vpop.f32.mrb[10].mxu1 }
 0x5db   : > { %v1259_v19 = vpop.f32.mrb[11].mxu1  ;;  %v1295_v23 = vadd.f32 %v1877_v27, %v1485_v40 }
 0x5dc   : > { %v1308_v20 = vadd.f32 %v1301_v54, %v1300_v49  ;;  %v1294_v32 = vadd.f32 %v1485_v40, %v1259_v19 }
 0x5dd   : > { %v1303_v29 = vmul.f32 %v1295_v23, %v2382_v8 }
 0x5de   : > { %v1302_v24 = vmul.f32 %v1294_v32, %v2380_v7  ;;  %v1880_v25 = vpop.f32.mrb[12].mxu1 }
 0x5df   : > { %v1269_v28 = vpop.f32.mrb[13].mxu1  ;;  %v1297_v34 = vadd.f32 %v1880_v25, %v1485_v40 }
 0x5e0   : > { %v1309_v30 = vadd.f32 %v1308_v20, %v1302_v24  ;;  %v1296_v35 = vadd.f32 %v1485_v40, %v1269_v28 }
 0x5e1   : > { %v1305_v38 = vmul.f32 %v1297_v34, %v2386_v10 }
 0x5e2   : > { %v1304_v36 = vmul.f32 %v1296_v35, %v2388_v11  ;;  %v1310_v37 = vadd.f32 %v1309_v30, %v1303_v29  ;;  %v1883_v9 = vpop.f32.mrb[14].mxu1 }
 0x5e3   : > { %v1279_v6 = vpop.f32.mrb[15].mxu1  ;;  %v1299_v33 = vadd.f32 %v1883_v9, %v1485_v40 }
 0x5e4   : > { %v1311_v39 = vadd.f32 %v1310_v37, %v1304_v36  ;;  %v1298_v50 = vadd.f32 %v1485_v40, %v1279_v6 }
 0x5e5   : > { %v1307_v8 = vmul.f32 %v1299_v33, %v2420_v58 }
 0x5e6   : > { %v1306_v7 = vmul.f32 %v1298_v50, %v2422_v0  ;;  %v1312_v31 = vadd.f32 %v1311_v39, %v1305_v38  ;;  %v2130_v0 = vpop.eup %2129 }
 0x5e8   : > { %v1313_v3 = vadd.f32 %v1312_v31, %v1306_v7 }
 0x5ea   : > { %v1314_v4 = vadd.f32 %v1313_v3, %v1307_v8 }
 0x5ec   : > { %v1315_v11 = vrot.slane %v1314_v4, 4 }
 0x5ee   : > { %v1316_v60 = vadd.f32 %v1315_v11, %v1314_v4 }
 0x5f0   : > { %v1317_v1 = vrot.slane %v1316_v60, 2 }
 0x5f2   : > { %v1318_v10 = vadd.f32 %v1317_v1, %v1316_v60 }
 0x5f4   : > { %v1319_v42 = vrot.slane %v1318_v10, 1 }
 0x5f6   : > { %v1320_v44 = vadd.f32 %v1319_v42, %v1318_v10 }
 0x5f8   : > { %v1348_v46 = vmul.f32 %v2130_v0, %v1320_v44 }
 0x5fa   : > { %1349 = vst [vmem:[%s219_s29] sm:$0x1] %v1348_v46 }
 0x5fb   : > { %2144 = shalt.err (!%p2141_p3)
}
 0x5fc   : > { %s2145_s28 = scalar_lea.hbm %s2739_s7, 16  ;;  %s2149_s14 = scalar_lea.hbm %s2785_s4, 64 }
 0x5fd   : > { %p2146_p4 = scmp.ne.s32.totalorder %s2739_s7, %s2145_s28  ;;  %p2150_p9 = scmp.lt.u32.totalorder %s2739_s7, %s2785_s4 }
 0x5fe   : > { %p2151_p10 = scmp.lt.u32.totalorder %s2149_s14, %s2145_s28  ;;  %p2153_p12 = scmp.lt.u32.totalorder %s2145_s28, %s2739_s7 }
 0x5ff   : > { %p2147_p7 = pnand %p2146_p4, %p2261_p5 }
 0x600   : > { %p2152_p11 = por %p2151_p10, %p2150_p9 }
 0x601   : > { %p2148_p8 = pneg %p2147_p7 }
 0x602   : > { %p2154_p13 = por %p2153_p12, %p2152_p11 }
 0x604   : > { %p2155_p0 = pnand %p2154_p13, %p2148_p8 }
 0x606   : > { %2158 = shalt.err (!%p2155_p0)
}
 0x607   : > { %2070 = dma.vmem_to_hbm [thread:$0]  (%p2261_p5), %s2741_s30, 16, %s2739_s7, %s1351_s8  }
 0x608 PF: > { %p2076_p1 = scmp.ge.s32.totalorder %s2193_s18, 2  ;;  %s1375_s23 = sand.u32 1, %s2181_s15  }
 0x609   : > { %s1376_s27 = scalar_lea.sflag [#allocation3], %s1375_s23 }
 0x60a   : > { %p2073_p2 = pnand %p2076_p1, %p2265_p6 }
 0x60c   : > { %2176 = dma.done.wait (!%p2073_p2), %s1376_s27, 16  }
 0x60d   : > { %2178 = vsyncadd (!%p2073_p2), %s1376_s27, 4294967280  ;;  %p14_p3 = scmp.ge.s32.totalorder %s2248_s21, 6   ;;  %s2788_s15 = smov %s2185_s16 }
 0x60e   : > { %s2789_s16 = smov %s2189_s17  ;;  %s2790_s17 = smov %s2259_s24 }
 0x60f   : > { %s2791_s18 = smov %s2248_s21  ;;  %16 = sbr.rel (!%p14_p3) target bundleno = 3 (0x3), region = 77 }
 0x616   :  { %1380 = vsyncpa [#allocation3], 1 }
 0x617   :  { %1382 = vsyncpa [#allocation3 + $0x1], 1 }

</bundles_post_ra>
